<compile_context>
chip_gen: v6e
topology: v6e:2x2x1
jax: 0.10.0
libtpu: 0.0.40
codegen_flags: <defaults>
</compile_context>

<pallas_src>
import functools

import jax
import jax.numpy as jnp
import numpy as np
from jax.experimental import pallas as pl
from jax.experimental.pallas import tpu as pltpu


# ----------------------------------------------------------------------------
# Kernels
# ----------------------------------------------------------------------------
def _channel_gate_fused_kernel(x_ref, w1_ref, w2_ref, o_ref):
    """Fused pool + complex MLP + gate apply for one (bb, 2, C, HW) slab.

    x_ref/o_ref : (bb, 2, C, HW)   [:,0]=real plane, [:,1]=imag plane
    w1_ref      : (2C + 1, 2Hid)   packed block weights, last row = bias
    w2_ref      : (2Hid + 1, 2C)   packed block weights, last row = bias
    """
    bb, _, C, _ = x_ref.shape
    C2 = 2 * C
    hid2 = w1_ref.shape[1]
    hp = jax.lax.Precision.HIGHEST

    # --- block-wide pooled statistics (no per-batch loop) --------------------
    # one lane-reduce each, then a single tiny reshape to the
    # (batch/pool on sublanes, 2C on lanes) layout for the MLP.
    avg = jnp.mean(x_ref[...], axis=-1).reshape(bb, C2)           # (bb, 2C)
    mx = jnp.max(x_ref[...], axis=-1).reshape(bb, C2)             # (bb, 2C)
    p = jnp.concatenate([avg, mx], axis=0)                        # (2bb, 2C)

    # --- complex MLP as two real matmuls on packed block weights -------------
    h = jnp.dot(p, w1_ref[:C2, :], precision=hp,
                preferred_element_type=jnp.float32) + w1_ref[C2:C2 + 1, :]
    h = jnp.maximum(h, 0.0)                    # ReLU on the real view
    z = jnp.dot(h, w2_ref[:hid2, :], precision=hp,
                preferred_element_type=jnp.float32) + w2_ref[hid2:hid2 + 1, :]

    # --- gate = sigmoid(mlp(avg) + mlp(max)); one sigmoid for the block ------
    g = jax.nn.sigmoid(z[:bb, :] + z[bb:, :])                     # (bb, 2C)
    g = g.reshape(bb, C2, 1)                                      # ch -> sublanes
    g_r = g[:, :C, :]                                             # (bb, C, 1)
    g_i = g[:, C:, :]                                             # (bb, C, 1)

    # --- vectorized complex gate apply: two block-wide, lane-dense stores ----
    xr = x_ref[:, 0]
    xi = x_ref[:, 1]
    o_ref[:, 0] = g_r * xr - g_i * xi
    o_ref[:, 1] = g_r * xi + g_i * xr


def _pool_gate_kernel(x_ref, w1_ref, w2_ref, g_ref, sum_acc, max_acc, *,
                      total_hw):
    """Pass 1 of the HW-tiled path: accumulate mean-sum / running max over HW
    tiles; at the last tile run the complex MLP + sigmoid and emit the gate."""
    j = pl.program_id(1)

    @pl.when(j == 0)
    def _init():
        sum_acc[...] = jnp.zeros_like(sum_acc)
        max_acc[...] = jnp.full_like(max_acc, -jnp.inf)

    xb = x_ref[...]                                               # (1, 2, C, thw)
    sum_acc[...] += jnp.sum(xb, axis=-1)
    max_acc[...] = jnp.maximum(max_acc[...], jnp.max(xb, axis=-1))

    @pl.when(j == pl.num_programs(1) - 1)
    def _finalize():
        bb, _, C = sum_acc.shape
        C2 = 2 * C
        hid2 = w1_ref.shape[1]
        hp = jax.lax.Precision.HIGHEST
        avg = (sum_acc[...] * (1.0 / total_hw)).reshape(bb, C2)
        mx = max_acc[...].reshape(bb, C2)
        p = jnp.concatenate([avg, mx], axis=0)                    # (2bb, 2C)
        h = jnp.dot(p, w1_ref[:C2, :], precision=hp,
                    preferred_element_type=jnp.float32) + w1_ref[C2:C2 + 1, :]
        h = jnp.maximum(h, 0.0)
        z = jnp.dot(h, w2_ref[:hid2, :], precision=hp,
                    preferred_element_type=jnp.float32) + w2_ref[hid2:hid2 + 1, :]
        g = jax.nn.sigmoid(z[:bb, :] + z[bb:, :])                 # (bb, 2C)
        g_ref[...] = g.reshape(bb, 2, C, 1)


def _gate_apply_kernel(g_ref, x_ref, o_ref):
    """Pass 2 of the HW-tiled path: stream HW tiles, apply the complex gate."""
    g_r = g_ref[:, 0]                                             # (bb, C, 1)
    g_i = g_ref[:, 1]
    xr = x_ref[:, 0]
    xi = x_ref[:, 1]
    o_ref[:, 0] = g_r * xr - g_i * xi
    o_ref[:, 1] = g_r * xi + g_i * xr


# ----------------------------------------------------------------------------
# Host-side helpers
# ----------------------------------------------------------------------------
def _hw_caps():
    """(max_block_bytes, vmem_limit_bytes) sized per TPU generation.

    The auto pipeline double-buffers input + output, so the resident working
    set is ~4x the block size plus tiny padded weight tiles.  v7x has 64 MiB
    of VMEM per TensorCore; v5e/v6e have 128 MiB."""
    vmem_phys = None
    try:
        info = pltpu.get_tpu_info()
        vmem_phys = getattr(info, "vmem_capacity_bytes", None)
    except Exception:
        vmem_phys = None
    if vmem_phys is not None and vmem_phys > 96 * 1024 * 1024:
        return 8 * 1024 * 1024, 64 * 1024 * 1024       # v5e / v6e (128 MiB)
    return 6 * 1024 * 1024, 32 * 1024 * 1024           # v7x-class (64 MiB)


def _pick_batch_tile(B, C, HW, *, target_bytes, max_block_bytes, max_batch=32):
    """Fold images per grid step so each step moves >= ~target bytes
    (amortizes the ~0.35us step overhead) while (a) the double-buffered
    in+out working set stays inside the scoped-VMEM budget and (b) the grid
    keeps >= 2 steps so both v7x TensorCores get work."""
    per_image = 2 * C * HW * 4
    grid_cap = B if B < 2 else B // 2       # keep grid length >= 2 (megacore)
    best = 1
    for cand in range(1, min(grid_cap, max_batch) + 1):
        if B % cand:
            continue
        if cand * per_image > max_block_bytes:
            break
        best = cand
        if cand * per_image >= target_bytes:
            break
    return best


def _pick_hw_tile(C, HW, *, target_bytes, max_block_bytes):
    """Largest lane-aligned HW tile (multiple of 128 dividing HW) that stays
    under the VMEM cap, stopping once ~target bytes per step is reached."""
    assert HW % 128 == 0, (
        "HW-tiled path needs H*W to be a multiple of 128; pad spatially "
        "host-side (mean denominator excludes pad, max padded with -inf).")
    per_col = 2 * C * 4
    best = 128
    for t in range(128, HW + 1, 128):
        if HW % t:
            continue
        if t * per_col > max_block_bytes:
            break
        best = t
        if t * per_col >= target_bytes:
            break
    return best


def pack_complex_mlp(w1r, w1i, b1r, b1i, w2r, w2i, b2r, b2i):
    """Pack the complex 1x1-conv layers (conv layout (out, in)) for the
    row-vector layout used in-kernel:
        [p_r, p_i] @ [[Wr^T,  Wi^T],
                      [-Wi^T, Wr^T]] + [br, bi]
    with the bias folded in as one extra weight row (3 kernel inputs total)."""
    w1t = jnp.block([[w1r.T, w1i.T], [-w1i.T, w1r.T]])            # (2C,   2Hid)
    w2t = jnp.block([[w2r.T, w2i.T], [-w2i.T, w2r.T]])            # (2Hid, 2C)
    b1 = jnp.concatenate([b1r, b1i])[None, :]                     # (1, 2Hid)
    b2 = jnp.concatenate([b2r, b2i])[None, :]                     # (1, 2C)
    w1_aug = jnp.concatenate([w1t, b1], axis=0)                   # (2C+1, 2Hid)
    w2_aug = jnp.concatenate([w2t, b2], axis=0)                   # (2Hid+1, 2C)
    return w1_aug, w2_aug


def channel_gate_complex(x_ri, w1_aug, w2_aug, *, batch_tile=None, hw_tile=None,
                         force_two_pass=False, target_bytes=4 * 1024 * 1024,
                         max_block_bytes=None, vmem_limit_bytes=None):
    """x_ri: (B, 2, C, HW) float32, [:, 0]=real plane, [:, 1]=imag plane.
    Returns the gated planes in the same layout."""
    B, two, C, HW = x_ri.shape
    assert two == 2
    auto_block, auto_vmem = _hw_caps()
    max_block_bytes = max_block_bytes or auto_block
    vmem_limit_bytes = vmem_limit_bytes or auto_vmem

    out_shape = jax.ShapeDtypeStruct((B, 2, C, HW), jnp.float32)
    per_image = 2 * C * HW * 4

    if not force_two_pass and per_image <= max_block_bytes:
        # ---- fused single-pass path: whole image slab(s) per grid step ------
        bb = batch_tile or _pick_batch_tile(
            B, C, HW, target_bytes=target_bytes,
            max_block_bytes=max_block_bytes)
        assert B % bb == 0
        x_spec = pl.BlockSpec((bb, 2, C, HW), lambda i: (i, 0, 0, 0))
        grid_spec = pltpu.PrefetchScalarGridSpec(
            num_scalar_prefetch=0,
            grid=(B // bb,),
            in_specs=[x_spec,
                      pl.BlockSpec(w1_aug.shape, lambda i: (0, 0)),
                      pl.BlockSpec(w2_aug.shape, lambda i: (0, 0))],
            out_specs=x_spec)
        return pl.pallas_call(
            _channel_gate_fused_kernel,
            out_shape=out_shape,
            grid_spec=grid_spec,
            compiler_params=pltpu.CompilerParams(
                dimension_semantics=("parallel",),   # batch -> v7x megacore
                vmem_limit_bytes=vmem_limit_bytes),
        )(x_ri, w1_aug, w2_aug)

    # ---- two-pass HW-tiled path (large H*W; v7x 64 MiB VMEM safe) ------------
    thw = hw_tile or _pick_hw_tile(C, HW, target_bytes=target_bytes,
                                   max_block_bytes=max_block_bytes)
    assert HW % thw == 0
    nhw = HW // thw

    x_tile = pl.BlockSpec((1, 2, C, thw), lambda i, j: (i, 0, 0, j))
    w1_spec = pl.BlockSpec(w1_aug.shape, lambda i, j: (0, 0))
    w2_spec = pl.BlockSpec(w2_aug.shape, lambda i, j: (0, 0))
    gate_spec = pl.BlockSpec((1, 2, C, 1), lambda i, j: (i, 0, 0, 0))

    # Pass 1: tiled pooling accumulators + MLP + sigmoid -> gate (B, 2, C, 1).
    gate = pl.pallas_call(
        functools.partial(_pool_gate_kernel, total_hw=HW),
        out_shape=jax.ShapeDtypeStruct((B, 2, C, 1), jnp.float32),
        grid_spec=pltpu.PrefetchScalarGridSpec(
            num_scalar_prefetch=0,
            grid=(B, nhw),
            in_specs=[x_tile, w1_spec, w2_spec],
            out_specs=gate_spec,
            scratch_shapes=[pltpu.VMEM((1, 2, C), jnp.float32),   # mean-sum
                            pltpu.VMEM((1, 2, C), jnp.float32)]), # running max
        compiler_params=pltpu.CompilerParams(
            dimension_semantics=("parallel", "arbitrary"),
            vmem_limit_bytes=vmem_limit_bytes),
    )(x_ri, w1_aug, w2_aug)

    # Pass 2: streaming gate apply over HW tiles.
    return pl.pallas_call(
        _gate_apply_kernel,
        out_shape=out_shape,
        grid_spec=pltpu.PrefetchScalarGridSpec(
            num_scalar_prefetch=0,
            grid=(B, nhw),
            in_specs=[gate_spec, x_tile],
            out_specs=x_tile),
        compiler_params=pltpu.CompilerParams(
            dimension_semantics=("parallel", "parallel"),
            vmem_limit_bytes=vmem_limit_bytes),
    )(gate, x_ri)


# ----------------------------------------------------------------------------
# Pure-JAX reference mirroring the PyTorch forward (split real/imag)
# ----------------------------------------------------------------------------
def reference(xr, xi, p):
    """xr, xi: (B, C, H, W) float32 -> (out_r, out_i) NCHW."""
    hp = jax.lax.Precision.HIGHEST
    avg_r, avg_i = xr.mean(axis=(2, 3)), xi.mean(axis=(2, 3))     # (B, C)
    max_r, max_i = xr.max(axis=(2, 3)), xi.max(axis=(2, 3))

    def mlp(pr, pi):
        hr = (jnp.dot(pr, p["w1r"].T, precision=hp)
              - jnp.dot(pi, p["w1i"].T, precision=hp) + p["b1r"])
        hi = (jnp.dot(pr, p["w1i"].T, precision=hp)
              + jnp.dot(pi, p["w1r"].T, precision=hp) + p["b1i"])
        hr, hi = jnp.maximum(hr, 0.0), jnp.maximum(hi, 0.0)
        zr = (jnp.dot(hr, p["w2r"].T, precision=hp)
              - jnp.dot(hi, p["w2i"].T, precision=hp) + p["b2r"])
        zi = (jnp.dot(hr, p["w2i"].T, precision=hp)
              + jnp.dot(hi, p["w2r"].T, precision=hp) + p["b2i"])
        return zr, zi

    ar, ai = mlp(avg_r, avg_i)
    mr, mi = mlp(max_r, max_i)
    gr = jax.nn.sigmoid(ar + mr)[:, :, None, None]
    gi = jax.nn.sigmoid(ai + mi)[:, :, None, None]
    return gr * xr - gi * xi, gr * xi + gi * xr


def _run_case(xr_nchw, xi_nchw, params, **kw):
    """Run the Pallas kernel on NCHW planes and check against the reference."""
    B, C, H, W = xr_nchw.shape
    HW = H * W
    # Host-side glue: NCHW complex -> (B, 2, C, H*W). Pure reshape + stack.
    x_ri = jnp.stack(
        [xr_nchw.reshape(B, C, HW), xi_nchw.reshape(B, C, HW)], axis=1)
    w1_aug, w2_aug = pack_complex_mlp(
        params["w1r"], params["w1i"], params["b1r"], params["b1i"],
        params["w2r"], params["w2i"], params["b2r"], params["b2i"])

    out = jax.block_until_ready(channel_gate_complex(x_ri, w1_aug, w2_aug, **kw))
    out_r = out[:, 0].reshape(B, C, H, W)
    out_i = out[:, 1].reshape(B, C, H, W)

    ref_r, ref_i = reference(xr_nchw, xi_nchw, params)
    np.testing.assert_allclose(np.asarray(out_r), np.asarray(ref_r),
                               rtol=1e-4, atol=1e-4)
    np.testing.assert_allclose(np.asarray(out_i), np.asarray(ref_i),
                               rtol=1e-4, atol=1e-4)
    return out_r, out_i


if __name__ == "__main__":
    # Shapes consistent with the module: gate_channels=32, reduction_ratio=16.
    C = 32
    reduction = 16
    hidden = C // reduction        # 2

    key = jax.random.PRNGKey(0)
    ks = jax.random.split(key, 14)

    # Synthetic complex 1x1-conv parameters in conv layout (out, in).
    params = {
        "w1r": jax.random.normal(ks[0], (hidden, C), jnp.float32) * 0.2,
        "w1i": jax.random.normal(ks[1], (hidden, C), jnp.float32) * 0.2,
        "b1r": jax.random.normal(ks[2], (hidden,), jnp.float32) * 0.1,
        "b1i": jax.random.normal(ks[3], (hidden,), jnp.float32) * 0.1,
        "w2r": jax.random.normal(ks[4], (C, hidden), jnp.float32) * 0.2,
        "w2i": jax.random.normal(ks[5], (C, hidden), jnp.float32) * 0.2,
        "b2r": jax.random.normal(ks[6], (C,), jnp.float32) * 0.1,
        "b2i": jax.random.normal(ks[7], (C,), jnp.float32) * 0.1,
    }

    # Case 1: demo shape (B=2, C=32, 16x16); heuristic picks bb=1 -> grid=(2,)
    # so both v7x TensorCores get one image each.
    xr1 = jax.random.normal(ks[8], (2, C, 16, 16), jnp.float32)
    xi1 = jax.random.normal(ks[9], (2, C, 16, 16), jnp.float32)
    out_r, out_i = _run_case(xr1, xi1, params)
    out_complex = np.asarray(out_r) + 1j * np.asarray(out_i)
    assert out_complex.shape == (2, C, 16, 16)

    # Case 2: batch folding (bb=4, grid=(2,)) exercises the block-wide pooling
    # and vectorized gate apply with bb > 1.
    xr2 = jax.random.normal(ks[10], (8, C, 16, 16), jnp.float32)
    xi2 = jax.random.normal(ks[11], (8, C, 16, 16), jnp.float32)
    _run_case(xr2, xi2, params, batch_tile=4)

    # Case 3: HW-tiled two-pass path (the large-H*W / v7x-64MiB structure),
    # forced at a small shape so it is exercised and verified here.
    xr3 = jax.random.normal(ks[12], (2, C, 32, 32), jnp.float32)
    xi3 = jax.random.normal(ks[13], (2, C, 32, 32), jnp.float32)
    _run_case(xr3, xi3, params, force_two_pass=True, hw_tile=256)

    print("KERNEL_OK")
</pallas_src>

<mosaic_0001>
module attributes {stable_mosaic.version = 11 : i64} {
  func.func @_channel_gate_fused_kernel(%arg0: i32, %arg1: memref<1x2x32x256xf32, #tpu.memory_space<vmem>>, %arg2: memref<65x4xf32, #tpu.memory_space<vmem>>, %arg3: memref<5x64xf32, #tpu.memory_space<vmem>>, %arg4: memref<1x2x32x256xf32, #tpu.memory_space<vmem>>) attributes {dimension_semantics = [#tpu.dimension_semantics<parallel>], iteration_bounds = array<i64: 2>, scalar_prefetch = 0 : i64, scratch_operands = 0 : i64, tpu.core_type = #tpu.core_type<tc>, window_params = [{transform_indices = @transform_0, window_bounds = array<i64: 1, 2, 32, 256>}, {pipeline_mode = #tpu.pipeline_mode<synchronous>, transform_indices = @transform_1, window_bounds = array<i64: 65, 4>}, {pipeline_mode = #tpu.pipeline_mode<synchronous>, transform_indices = @transform_2, window_bounds = array<i64: 5, 64>}, {transform_indices = @transform_3, window_bounds = array<i64: 1, 2, 32, 256>}]} {
    %c0 = arith.constant 0 : index
    %c0_0 = arith.constant 0 : index
    %c0_1 = arith.constant 0 : index
    %c0_2 = arith.constant 0 : index
    %0 = vector.load %arg1[%c0, %c0_0, %c0_1, %c0_2] : memref<1x2x32x256xf32, #tpu.memory_space<vmem>>, vector<1x2x32x256xf32>
    %cst = arith.constant dense<0.000000e+00> : vector<1x2x32xf32>
    %1 = vector.multi_reduction <add>, %0, %cst [3] : vector<1x2x32x256xf32> to vector<1x2x32xf32>
    %cst_3 = arith.constant 2.560000e+02 : f32
    %2 = vector.broadcast %cst_3 : f32 to vector<1x2x32xf32>
    %3 = arith.divf %1, %2 : vector<1x2x32xf32>
    %4 = vector.shape_cast %3 : vector<1x2x32xf32> to vector<1x64xf32>
    %c0_4 = arith.constant 0 : index
    %c0_5 = arith.constant 0 : index
    %c0_6 = arith.constant 0 : index
    %c0_7 = arith.constant 0 : index
    %5 = vector.load %arg1[%c0_4, %c0_5, %c0_6, %c0_7] : memref<1x2x32x256xf32, #tpu.memory_space<vmem>>, vector<1x2x32x256xf32>
    %cst_8 = arith.constant dense<0xFF800000> : vector<1x2x32xf32>
    %6 = vector.multi_reduction <maximumf>, %5, %cst_8 [3] : vector<1x2x32x256xf32> to vector<1x2x32xf32>
    %7 = vector.shape_cast %6 : vector<1x2x32xf32> to vector<1x64xf32>
    %8 = tpu.concatenate %4, %7 in 0 : vector<1x64xf32>, vector<1x64xf32> -> vector<2x64xf32>
    %c0_9 = arith.constant 0 : index
    %c0_10 = arith.constant 0 : index
    %9 = vector.load %arg2[%c0_9, %c0_10] : memref<65x4xf32, #tpu.memory_space<vmem>>, vector<64x4xf32>
    %cst_11 = arith.constant dense<0.000000e+00> : vector<2x4xf32>
    %10 = tpu.matmul %8, %9, %cst_11 {dimension_numbers = #tpu.dot_dimension_numbers<[1], [0], [0], [1], [0, 0, 1, 1], [], []>, precision = #tpu.contract_precision<fp32>} : vector<2x64xf32>, vector<64x4xf32>, vector<2x4xf32> -> vector<2x4xf32>
    %c64 = arith.constant 64 : index
    %c0_12 = arith.constant 0 : index
    %11 = vector.load %arg2[%c64, %c0_12] : memref<65x4xf32, #tpu.memory_space<vmem>>, vector<1x4xf32>
    %12 = vector.broadcast %11 : vector<1x4xf32> to vector<2x4xf32>
    %13 = arith.addf %10, %12 : vector<2x4xf32>
    %cst_13 = arith.constant 0.000000e+00 : f32
    %14 = vector.broadcast %cst_13 : f32 to vector<2x4xf32>
    %15 = arith.maximumf %13, %14 : vector<2x4xf32>
    %c0_14 = arith.constant 0 : index
    %c0_15 = arith.constant 0 : index
    %16 = vector.load %arg3[%c0_14, %c0_15] : memref<5x64xf32, #tpu.memory_space<vmem>>, vector<4x64xf32>
    %cst_16 = arith.constant dense<0.000000e+00> : vector<2x64xf32>
    %17 = tpu.matmul %15, %16, %cst_16 {dimension_numbers = #tpu.dot_dimension_numbers<[1], [0], [0], [1], [0, 0, 1, 1], [], []>, precision = #tpu.contract_precision<fp32>} : vector<2x4xf32>, vector<4x64xf32>, vector<2x64xf32> -> vector<2x64xf32>
    %c4 = arith.constant 4 : index
    %c0_17 = arith.constant 0 : index
    %18 = vector.load %arg3[%c4, %c0_17] : memref<5x64xf32, #tpu.memory_space<vmem>>, vector<1x64xf32>
    %19 = vector.broadcast %18 : vector<1x64xf32> to vector<2x64xf32>
    %20 = arith.addf %17, %19 : vector<2x64xf32>
    %21 = vector.extract_strided_slice %20 {offsets = [0, 0], sizes = [1, 64], strides = [1, 1]} : vector<2x64xf32> to vector<1x64xf32>
    %22 = vector.extract_strided_slice %20 {offsets = [1, 0], sizes = [1, 64], strides = [1, 1]} : vector<2x64xf32> to vector<1x64xf32>
    %23 = arith.addf %21, %22 : vector<1x64xf32>
    %24 = arith.negf %23 : vector<1x64xf32>
    %25 = math.exp %24 : vector<1x64xf32>
    %cst_18 = arith.constant 1.000000e+00 : f32
    %26 = vector.broadcast %cst_18 : f32 to vector<1x64xf32>
    %27 = arith.addf %26, %25 : vector<1x64xf32>
    %28 = arith.divf %26, %27 : vector<1x64xf32>
    %29 = vector.shape_cast %28 : vector<1x64xf32> to vector<1x64x1xf32>
    %30 = vector.extract_strided_slice %29 {offsets = [0, 0, 0], sizes = [1, 32, 1], strides = [1, 1, 1]} : vector<1x64x1xf32> to vector<1x32x1xf32>
    %31 = vector.extract_strided_slice %29 {offsets = [0, 32, 0], sizes = [1, 32, 1], strides = [1, 1, 1]} : vector<1x64x1xf32> to vector<1x32x1xf32>
    %c0_19 = arith.constant 0 : index
    %c0_20 = arith.constant 0 : index
    %c0_21 = arith.constant 0 : index
    %c0_22 = arith.constant 0 : index
    %32 = vector.load %arg1[%c0_19, %c0_20, %c0_21, %c0_22] : memref<1x2x32x256xf32, #tpu.memory_space<vmem>>, vector<1x1x32x256xf32>
    %33 = vector.shape_cast %32 : vector<1x1x32x256xf32> to vector<1x32x256xf32>
    %c0_23 = arith.constant 0 : index
    %c1 = arith.constant 1 : index
    %c0_24 = arith.constant 0 : index
    %c0_25 = arith.constant 0 : index
    %34 = vector.load %arg1[%c0_23, %c1, %c0_24, %c0_25] : memref<1x2x32x256xf32, #tpu.memory_space<vmem>>, vector<1x1x32x256xf32>
    %35 = vector.shape_cast %34 : vector<1x1x32x256xf32> to vector<1x32x256xf32>
    %36 = vector.broadcast %30 : vector<1x32x1xf32> to vector<1x32x256xf32>
    %37 = arith.mulf %36, %33 : vector<1x32x256xf32>
    %38 = vector.broadcast %31 : vector<1x32x1xf32> to vector<1x32x256xf32>
    %39 = arith.mulf %38, %35 : vector<1x32x256xf32>
    %40 = arith.subf %37, %39 : vector<1x32x256xf32>
    %c0_26 = arith.constant 0 : index
    %c0_27 = arith.constant 0 : index
    %c0_28 = arith.constant 0 : index
    %c0_29 = arith.constant 0 : index
    %41 = vector.load %arg4[%c0_26, %c0_27, %c0_28, %c0_29] : memref<1x2x32x256xf32, #tpu.memory_space<vmem>>, vector<1x1x32x256xf32>
    %42 = vector.shape_cast %41 : vector<1x1x32x256xf32> to vector<1x32x256xf32>
    %43 = vector.shape_cast %40 : vector<1x32x256xf32> to vector<1x1x32x256xf32>
    tpu.vector_store %arg4[%c0_26, %c0_27, %c0_28, %c0_29], %43 {strides = array<i32>} : memref<1x2x32x256xf32, #tpu.memory_space<vmem>>, vector<1x1x32x256xf32>,
    %44 = vector.broadcast %30 : vector<1x32x1xf32> to vector<1x32x256xf32>
    %45 = arith.mulf %44, %35 : vector<1x32x256xf32>
    %46 = vector.broadcast %31 : vector<1x32x1xf32> to vector<1x32x256xf32>
    %47 = arith.mulf %46, %33 : vector<1x32x256xf32>
    %48 = arith.addf %45, %47 : vector<1x32x256xf32>
    %c0_30 = arith.constant 0 : index
    %c1_31 = arith.constant 1 : index
    %c0_32 = arith.constant 0 : index
    %c0_33 = arith.constant 0 : index
    %49 = vector.load %arg4[%c0_30, %c1_31, %c0_32, %c0_33] : memref<1x2x32x256xf32, #tpu.memory_space<vmem>>, vector<1x1x32x256xf32>
    %50 = vector.shape_cast %49 : vector<1x1x32x256xf32> to vector<1x32x256xf32>
    %51 = vector.shape_cast %48 : vector<1x32x256xf32> to vector<1x1x32x256xf32>
    tpu.vector_store %arg4[%c0_30, %c1_31, %c0_32, %c0_33], %51 {strides = array<i32>} : memref<1x2x32x256xf32, #tpu.memory_space<vmem>>, vector<1x1x32x256xf32>,
    return
  }
  func.func @transform_0(%arg0: i32) -> (i32, i32, i32, i32) {
    %c0_i32 = arith.constant 0 : i32
    %c0_i32_0 = arith.constant 0 : i32
    %c0_i32_1 = arith.constant 0 : i32
    %c0_i32_2 = arith.constant 0 : i32
    return %arg0, %c0_i32, %c0_i32_0, %c0_i32_1 : i32, i32, i32, i32
  }
  func.func @transform_1(%arg0: i32) -> (i32, i32) {
    %c0_i32 = arith.constant 0 : i32
    %c0_i32_0 = arith.constant 0 : i32
    %c0_i32_1 = arith.constant 0 : i32
    return %c0_i32, %c0_i32_0 : i32, i32
  }
  func.func @transform_2(%arg0: i32) -> (i32, i32) {
    %c0_i32 = arith.constant 0 : i32
    %c0_i32_0 = arith.constant 0 : i32
    %c0_i32_1 = arith.constant 0 : i32
    return %c0_i32, %c0_i32_0 : i32, i32
  }
  func.func @transform_3(%arg0: i32) -> (i32, i32, i32, i32) {
    %c0_i32 = arith.constant 0 : i32
    %c0_i32_0 = arith.constant 0 : i32
    %c0_i32_1 = arith.constant 0 : i32
    %c0_i32_2 = arith.constant 0 : i32
    return %arg0, %c0_i32, %c0_i32_0, %c0_i32_1 : i32, i32, i32, i32
  }
}

</mosaic_0001>

<bundles_post_ra>
// kernel: tpu_custom_call.1
= control target key start
LH: loop header
LB: loop body
LE: loop exit
PB: predicated region body
PF: predicated region fallthrough
CT: control target
= control target key end

     0   :  { %8 = vsyncpa [#allocation3], 0  ;;  %s2647_s0 = inlined_call_operand.hbm [shape: f32[2,2,32,256], index: 0, kind: input, shape index: {}]   ;;  %s2648_s1 = inlined_call_operand.vmem [shape: f32[65,4], index: 1, kind: input, shape index: {}]   ;;  %s2649_s2 = inlined_call_operand.vmem [shape: f32[5,64], index: 2, kind: input, shape index: {}]   ;;  %s2650_s3 = inlined_call_operand.hbm [shape: f32[2,2,32,256], index: 3, kind: output, shape index: {}]  }
   0x1   :  { %10 = vsyncpa [#allocation3 + $0x1], 0 }
   0x2   :  { %11 = vsyncpa [#allocation4], 0 }
   0x3   :  { %13 = vsyncpa [#allocation4 + $0x1], 0  ;;  %s2055_s12 = smov 0   ;;  %s2057_s13 = smov 0  }
   0x4   :  { %s2059_s14 = smov 0   ;;  %s2061_s15 = smov 0  }
   0x5 LB: > { %s2076_s16 = sadd.s32 4294967295, %s2023_s15   ;;  %s1628_s17 = sadd.s32 4294967294, %s2023_s15   ;;  %s2023_s15 = sphi %s2061_s15, %s2675_s15   ;;  %s2019_s14 = sphi %s2059_s14, %s2674_s14   ;;  %s2015_s13 = sphi %s2057_s13, %s2673_s13   ;;  %s2011_s12 = sphi %s2055_s12, %s2672_s12  }
   0x6   : > { %s2080_s18 = sadd.s32 1, %s2023_s15   ;;  %s26_s19 = sadd.s32 1, %s2019_s14 }
   0x7   : > { %s23_s20 = ssub.s32 %s2023_s15, %s2080_s18  ;;  %p33_p0 = scmp.ne.s32.totalorder %s2019_s14, %s2015_s13 }
   0x8   : > { %p24_p1 = scmp.eq.s32.totalorder %s23_s20, 0  ;;  %p34_p2 = scmp.eq.s32.totalorder %s2023_s15, 0 }
   0x9   : > { %p39_p3 = scmp.ne.s32.totalorder %s2015_s13, %s2011_s12  ;;  %p40_p4 = scmp.eq.s32.totalorder %s2076_s16, 0 }
   0xa   : > { %s2092_s21 = scalar_select %p24_p1, %s2019_s14, %s26_s19  }
   0xb   : > { %p2094_p5 = por %p34_p2, %p33_p0  ;;  %p2098_p6 = por %p40_p4, %p39_p3 }
   0xc   : > { %p105_p7 = scmp.eq.s32.totalorder %s2076_s16, 1  ;;  %p111_p8 = scmp.eq.s32.totalorder %s1628_s17, 1 }
   0xd   : > { %s2659_s23 = scalar_select %p2098_p6, 1, 0 }
   0xe   : > { %p1885_p10 = scmp.lt.s32.totalorder %s2023_s15, 2  ;;  %p2105_p11 = por %p105_p7, %p33_p0 }
   0xf   : > { %p2109_p12 = por %p111_p8, %p39_p3  ;;  %s137_s26 = sand.u32 1, %s2019_s14  }
  0x10   : > { %s2660_s24 = scalar_select %p2105_p11, 1, 0 }
  0x11   : > { %s2661_s25 = scalar_select %p2109_p12, 1, 0 }
  0x12   : > { %s1661_s27 = sshll.u32 %s2023_s15, 11  ;;  %s1631_s28 = sshll.u32 %s137_s26, 7 }
  0x13   : > { %s2118_s4 = scalar_lea.hbm %s2647_s0, %s1661_s27  ;;  %s141_s5 = scalar_lea.vmem [#allocation2], %s1631_s28 }
  0x14   : > { %s148_s6 = sshll.u32 %s141_s5, 4  ;;  %p2122_p13 = pnand %p1885_p10, %p2094_p5  ;;  %s2126_s6 = int_to_ptr.vmem [resolvable:$true] %s148_s6 }
  0x15   : > { %s2128_s8 = scalar_lea.sflag [#allocation3], %s137_s26  ;;  %s1931_s9 = scalar_lea.hbm %s2118_s4, 2048 }
  0x16   : > { %p1932_p0 = scmp.ne.s32.totalorder %s2118_s4, %s1931_s9  ;;  %p1933_p1 = pneg %p2122_p13 }
  0x17   : > { %s1936_s17 = scalar_lea.hbm %s2647_s0, 4096  ;;  %p1937_p4 = scmp.lt.s32.totalorder %s2118_s4, %s2647_s0 }
  0x18   : > { %p1934_p2 = pnand %p1933_p1, %p1932_p0  ;;  %p1938_p5 = scmp.lt.s32.totalorder %s1936_s17, %s1931_s9 }
  0x1a   : > { %p1935_p3 = pneg %p1934_p2  ;;  %p1939_p7 = por %p1938_p5, %p1937_p4 }
  0x1c   : > { %p1940_p8 = pnand %p1939_p7, %p1935_p3 }
  0x1e   : > { %1943 = shalt.err (!%p1940_p8)
}
  0x1f   : > { %s1944_s22 = scalar_lea.vmem %s2126_s6, 2048  ;;  %s2025_s26 = smov [#allocation2]  }
  0x20   : > { %p1945_p10 = scmp.ne.s32.totalorder %s2126_s6, %s1944_s22  ;;  %s1949_s27 = sshll.u32 %s2025_s26, 4  ;;  %s1950_s27 = int_to_ptr.vmem [resolvable:$false] %s1949_s27 }
  0x21   : > { %s1951_s28 = scalar_lea.vmem %s1950_s27, 4096  ;;  %p1952_p2 = scmp.lt.s32.totalorder %s2126_s6, %s1950_s27 }
  0x22   : > { %p1947_p9 = pnand %p1945_p10, %p1933_p1  ;;  %p1953_p12 = scmp.lt.s32.totalorder %s1951_s28, %s1944_s22 }
  0x24   : > { %p1948_p0 = pneg %p1947_p9  ;;  %p1954_p11 = por %p1953_p12, %p1952_p2 }
  0x26   : > { %p1955_p6 = pnand %p1954_p11, %p1948_p0 }
  0x28   : > { %1958 = shalt.err (!%p1955_p6)
}
  0x29   : > { %s2026_s29 = smov 256   ;;  %s2027_s30 = smov 16  }
  0x2a   : > { %1880 = dma.hbm_to_vmem [thread:$0]  (!%p2122_p13), %s2118_s4, 2048, %s2126_s6, %s2128_s8, %s2026_s29, %s2026_s29, %s2027_s30  }
  0x2b   : > { %p1634_p9 = scmp.ge.s32.totalorder %s2023_s15, 1  ;;  %p156_p1 = scmp.lt.s32.totalorder %s2023_s15, 3 }
  0x2d   : > { %p157_p3 = pnand %p1634_p9, %p156_p1 }
  0x2e   : > { %s2152_s5 = sand.u32 (!%p157_p3), 1, %s2015_s13   ;;  %p2663_p6 = scmp.ne.s32.totalorder (!%p157_p3), %s2659_s23, 0 }
  0x2f   : > { %160 = sbr.rel (%p157_p3) target bundleno = 998 (0x3e6), region = 32  ;;  %s1635_s9 = sshll.u32 (!%p157_p3), %s2152_s5, 7 }
  0x30   : > { %s163_s10 = scalar_lea.sflag (!%p157_p3), [#allocation3], %s2152_s5  ;;  %s2158_s11 = scalar_lea.vmem (!%p157_p3), [#allocation2], %s1635_s9 }
  0x34   : > { %2002 = dma.done.wait (%p2663_p6), %s163_s10, 2048  }
  0x35   : > { %2004 = vsyncadd (%p2663_p6), %s163_s10, 4294965248  ;;  %v2165_v0 = vld [vmem:[%s2158_s11 + $0x40] sm:$0xff]  ;;  %v2168_v1 = vld [vmem:[%s2158_s11 + $0x48] sm:$0xff]  ;;  %v2028_v32 = vmov 0.0   ;;  %v246_v61 = vlaneseq  ;;  %vm257_vm0 = vcmask 130112   ;;  %vm264_vm1 = vcmask 195712  }
  0x36   : > { %v2171_v2 = vld [vmem:[%s2158_s11] sm:$0xff]  ;;  %v217_v3 = vadd.f32 %v2168_v1, %v2165_v0  ;;  %v2176_v4 = vld [vmem:[%s2158_s11 + $0x8] sm:$0xff]  ;;  %v2179_v5 = vld [vmem:[%s2158_s11 + $0x50] sm:$0xff]  ;;  %v321_v15 = vmax.f32 %v2165_v0, %v2168_v1  ;;  %1748 = vmatprep.subr.mxu1 %v2028_v32  ;;  %1729 = vmatprep.subr.mxu0 %v2028_v32  ;;  %vm271_vm2 = vcmask 261312   ;;  %vm292_vm3 = vcmask 1041409   ;;  %s2031_s23 = smov 32  }
  0x37   : > { %v2182_v6 = vld [vmem:[%s2158_s11 + $0x58] sm:$0xff]  ;;  %v205_v7 = vadd.f32 %v2176_v4, %v2171_v2  ;;  %v2187_v8 = vld [vmem:[%s2158_s11 + $0x10] sm:$0xff]  ;;  %v309_v13 = vmax.f32 %v2171_v2, %v2176_v4  ;;  %v2205_v16 = vld [vmem:[%s2158_s11 + $0x60] sm:$0xff]  ;;  %vm2030_vm4 = vmmov 0   ;;  %vm307_vm5 = vcmask 261120   ;;  %s2559_s20 = scalar_lea.vmem [#allocation5], %s1635_s9 }
  0x38   : > { %v2190_v9 = vld [vmem:[%s2158_s11 + $0x18] sm:$0xff]  ;;  %218 = vadd.xlane.f32.xlu1 %v217_v3  ;;  %v220_v10 = vadd.f32 %v2182_v6, %v2179_v5  ;;  %v324_v14 = vmax.f32 %v2179_v5, %v2182_v6  ;;  %v2208_v17 = vld [vmem:[%s2158_s11 + $0x68] sm:$0xff]  ;;  %v2211_v18 = vld [vmem:[%s2158_s11 + $0x20] sm:$0xff]  ;;  %v247_v3 = vand.u32 127, %v246_v61  ;;  %1764 = vmatprep.mubr.msk.f32.mxu1 %vm2030_vm4, %v2028_v32  ;;  %vm397_vm6 = vcmask 1040384   ;;  %s1662_s9 = sshll.u32 %s2076_s16, 11 }
  0x39   : > { %206 = vadd.xlane.f32.xlu0 %v205_v7  ;;  %v208_v11 = vadd.f32 %v2190_v9, %v2187_v8  ;;  %v312_v12 = vmax.f32 %v2187_v8, %v2190_v9  ;;  %v2214_v19 = vld [vmem:[%s2158_s11 + $0x28] sm:$0xff]  ;;  %v223_v20 = vadd.f32 %v2208_v17, %v2205_v16  ;;  %v327_v22 = vmax.f32 %v2205_v16, %v2208_v17  ;;  %v2225_v24 = vld [vmem:[%s2158_s11 + $0x70] sm:$0xff]  ;;  %v2228_v25 = vld [vmem:[%s2158_s11 + $0x78] sm:$0xff]  ;;  %s1555_s22 = sshll.u32 %s2559_s20, 4  ;;  %s2598_s27 = scalar_lea.hbm %s2650_s3, %s1662_s9  ;;  %s2600_s22 = int_to_ptr.vmem [resolvable:$true] %s1555_s22 }
  0x3a   : > { %v211_v21 = vadd.f32 %v2214_v19, %v2211_v18  ;;  %v315_v23 = vmax.f32 %v2211_v18, %v2214_v19  ;;  %v2231_v26 = vld [vmem:[%s2158_s11 + $0x30] sm:$0xff]  ;;  %v2234_v27 = vld [vmem:[%s2158_s11 + $0x38] sm:$0xff]  ;;  %v226_v28 = vadd.f32 %v2228_v25, %v2225_v24  ;;  %v330_v30 = vmax.f32 %v2225_v24, %v2228_v25  ;;  %v404_v35 = vld [vmem:[%s2648_s1 + $0x28] sm:$0xff]  ;;  %1745 = vmatprep.mubr.msk.f32.mxu0 %vm2030_vm4, %v2028_v32  ;;  %s1542_s28 = scalar_lea.sflag [#allocation4], %s2152_s5  ;;  %s1959_s29 = scalar_lea.vmem %s2600_s22, 2048 }
  0x3b   : > { %v214_v29 = vadd.f32 %v2234_v27, %v2231_v26  ;;  %v318_v31 = vmax.f32 %v2231_v26, %v2234_v27  ;;  %v406_v33 = vld [vmem:[%s2648_s1 + $0x38] sm:$0xff]  ;;  %v405_v34 = vld [vmem:[%s2648_s1 + $0x30] sm:$0xff]  ;;  %v2259_v38 = vand.u32 4294901760, %v404_v35  ;;  %v403_v39 = vld [vmem:[%s2648_s1 + $0x20] sm:$0xff]  ;;  %v2310_v7 = vshrl.u32 %v246_v61, 7  ;;  %p1960_p11 = scmp.ne.s32.totalorder %s2600_s22, %s1959_s29  ;;  %p2669_p12 = scmp.ne.s32.totalorder %s2660_s24, 0 }
  0x3c   : > { %221 = vadd.xlane.f32.xlu1 %v220_v10  ;;  %v2255_v36 = vand.u32 4294901760, %v406_v33  ;;  %v2257_v37 = vand.u32 4294901760, %v405_v34  ;;  %v2264_v40 = vand.u32 4294901760, %v403_v39  ;;  %v2029_v10 = vmov 1934713408   ;;  %s2032_s30 = smov [#allocation5]  }
  0x3d   : > { %209 = vadd.xlane.f32.xlu0 %v208_v11  ;;  %v2273_v43 = vsub.f32 %v404_v35, %v2259_v38  ;;  %v296_v11 = vunpack.c.l.s4 %v2029_v10  ;;  %vm412_vm7 = vcmask 523264   ;;  %vm964_vm8 = vcmask 1043456   ;;  %p1961_p13 = pnand %p1960_p11, %p2669_p12  ;;  %s1963_s10 = sshll.u32 %s2032_s30, 4  ;;  %s1964_s10 = int_to_ptr.vmem [resolvable:$false] %s1963_s10 }
  0x3e   : > { %v2267_v41 = vsub.f32 %v406_v33, %v2255_v36  ;;  %v2270_v42 = vsub.f32 %v405_v34, %v2257_v37  ;;  %1730 = vmatpush3.msra.mxu0 %v2255_v36  ;;  %v2277_v44 = vsub.f32 %v403_v39, %v2264_v40  ;;  %vm960_vm9 = vcmask 31744   ;;  %s1965_s11 = scalar_lea.vmem %s1964_s10, 4096  ;;  %p1966_p5 = scmp.lt.s32.totalorder %s2600_s22, %s1964_s10 }
  0x3f   : > { %1731 = vmatprep.subr.mxu0 %v2028_v32  ;;  %v2656_v47 = vand.u32 4294901760, %v2273_v43  ;;  %p1962_p4 = pneg %p1961_p13  ;;  %p1967_p7 = scmp.lt.s32.totalorder %s1965_s11, %s1959_s29 }
  0x40   : > { %313 = vmax.xlane.f32.xlu1 %v312_v12  ;;  %v518_v45 = vand.u32 4294901760, %v2267_v41  ;;  %v525_v46 = vand.u32 4294901760, %v2270_v42  ;;  %1732 = vmatpush3.msra.mxu0 %v2257_v37  ;;  %v2654_v48 = vand.u32 4294901760, %v2277_v44  ;;  %v252_v12 = vadd.s32 4294967288, %v247_v3 }
  0x41   : > { %310 = vmax.xlane.f32.xlu0 %v309_v13  ;;  %1733 = vmatprep.subr.mxu0 %v2028_v32  ;;  %v533_v51 = vsub.f32 %v2273_v43, %v2656_v47  ;;  %p1968_p8 = por %p1967_p7, %p1966_p5 }
  0x42   : > { %v519_v49 = vsub.f32 %v2267_v41, %v518_v45  ;;  %v526_v50 = vsub.f32 %v2270_v42, %v525_v46  ;;  %1734 = vmatpush3.msra.mxu0 %v2259_v38  ;;  %v540_v54 = vsub.f32 %v2277_v44, %v2654_v48 }
  0x43   : > { %1735 = vmatprep.subr.mxu0 %v2028_v32  ;;  %v534_v55 = vand.u32 4294901760, %v533_v51  ;;  %v400_v51 = vld [vmem:[%s2648_s1 + $0x8] sm:$0xff]  ;;  %p1969_p10 = pnand %p1968_p8, %p1962_p4 }
  0x44   : > { %325 = vmax.xlane.f32.xlu1 %v324_v14  ;;  %v520_v52 = vand.u32 4294901760, %v519_v49  ;;  %v527_v53 = vand.u32 4294901760, %v526_v50  ;;  %1736 = vmatpush3.msra.mxu0 %v2264_v40  ;;  %v541_v56 = vand.u32 4294901760, %v540_v54 }
  0x45   : > { %322 = vmax.xlane.f32.xlu0 %v321_v15  ;;  %1737 = vmatprep.subr.mxu0 %v2028_v32  ;;  %v402_v15 = vld [vmem:[%s2648_s1 + $0x18] sm:$0xff] }
  0x46   : > { %1749 = vmatpush3.msra.mxu1 %v520_v52 }
  0x47   : > { %1750 = vmatprep.subr.mxu1 %v2028_v32 }
  0x48   : > { %224 = vadd.xlane.f32.xlu1 %v223_v20  ;;  %1751 = vmatpush3.msra.mxu1 %v527_v53  ;;  %v2319_v20 = vand.u32 4294901760, %v402_v15 }
  0x49   : > { %212 = vadd.xlane.f32.xlu0 %v211_v21  ;;  %1752 = vmatprep.subr.mxu1 %v2028_v32  ;;  %v2322_v21 = vsub.s32 %v247_v3, %v2310_v7 }
  0x4a   : > { %1753 = vmatpush3.msra.mxu1 %v534_v55  ;;  %v2331_v33 = vsub.f32 %v402_v15, %v2319_v20  ;;  %1738 = vmatpush3.msra.mxu0 %v2319_v20  ;;  %v2344_v55 = vand.u32 4294901760, %v400_v51 }
  0x4b   : > { %1754 = vmatprep.subr.mxu1 %v2028_v32  ;;  %1739 = vmatprep.subr.mxu0 %v2028_v32 }
  0x4c   : > { %328 = vmax.xlane.f32.xlu1 %v327_v22  ;;  %1755 = vmatpush3.msra.mxu1 %v541_v56  ;;  %v259_v22 = vadd.s32 4294967280, %v247_v3  ;;  %v2653_v53 = vand.u32 4294901760, %v2331_v33 }
  0x4d   : > { %316 = vmax.xlane.f32.xlu0 %v315_v23  ;;  %1756 = vmatprep.subr.mxu1 %v2028_v32  ;;  %v266_v23 = vadd.s32 4294967272, %v247_v3 }
  0x4e   : > { %v2348_v56 = vsub.s32 %v259_v22, %v2310_v7  ;;  %v547_v3 = vsub.f32 %v2331_v33, %v2653_v53 }
  0x50   : > { %227 = vadd.xlane.f32.xlu1 %v226_v28  ;;  %v297_v28 = vunpack.c.0.s8 %v296_v11  ;;  %v2365_v11 = vsub.f32 %v400_v51, %v2344_v55  ;;  %v548_v53 = vand.u32 4294901760, %v547_v3 }
  0x51   : > { %215 = vadd.xlane.f32.xlu0 %v214_v29  ;;  %v401_v29 = vld [vmem:[%s2648_s1 + $0x10] sm:$0xff] }
  0x52   : > { %v2333_v34 = vand.u32 4294901760, %v401_v29  ;;  %v2657_v48 = vand.u32 4294901760, %v2365_v11  ;;  %1757 = vmatpush3.msra.mxu1 %v548_v53 }
  0x53   : > { %1758 = vmatprep.subr.mxu1 %v2028_v32 }
  0x54   : > { %331 = vmax.xlane.f32.xlu1 %v330_v30  ;;  %v2328_v30 = vsub.s32 %v252_v12, %v2310_v7  ;;  %v2342_v54 = vsub.f32 %v401_v29, %v2333_v34  ;;  %1740 = vmatpush3.msra.mxu0 %v2333_v34 }
  0x55   : > { %319 = vmax.xlane.f32.xlu0 %v318_v31  ;;  %1741 = vmatprep.subr.mxu0 %v2028_v32 }
  0x56   : > { %v2655_v10 = vand.u32 4294901760, %v2342_v54  ;;  %1742 = vmatpush3.msra.mxu0 %v2344_v55 }
  0x57   : > { %1743 = vmatprep.subr.mxu0 %v2028_v32 }
  0x58   : > { %v554_v51 = vsub.f32 %v2342_v54, %v2655_v10 }
  0x5a   : > { %v555_v10 = vand.u32 4294901760, %v554_v51 }
  0x5c   : > { %1759 = vmatpush3.msra.mxu1 %v555_v10 }
  0x5d   : > { %1760 = vmatprep.subr.mxu1 %v2028_v32 }
  0xc1   : > { %v219_v57 = vpop.xlane.xlu1 %218 }
  0xc2   : > { %v207_v58 = vpop.xlane.xlu0 %206  ;;  %v234_v35 = vmul.f32 0.00390625, %v219_v57  ;;  %v2351_v57 = vsub.s32 %v266_v23, %v2310_v7 }
  0xc3   : > { %v230_v39 = vmul.f32 0.00390625, %v207_v58  ;;  %v2354_v58 = vsub.s32 %v297_v28, %v2310_v7 }
  0xc4   : > { %v276_v12 = vrot.slane %v234_v35, %v2322_v21 }
  0xc5   : > { %v222_v59 = vpop.xlane.xlu1 %221  ;;  %v251_v29 = vrot.slane %v230_v39, %v2322_v21 }
  0xc6   : > { %v210_v60 = vpop.xlane.xlu0 %209  ;;  %v235_v49 = vmul.f32 0.00390625, %v222_v59  ;;  %v399_v59 = vld [vmem:[%s2648_s1] sm:$0xff] }
  0xc7   : > { %v231_v52 = vmul.f32 0.00390625, %v210_v60  ;;  %v2370_v28 = vand.u32 4294901760, %v399_v59 }
  0xc8   : > { %v280_v15 = vrot.slane %v235_v49, %v2328_v30 }
  0xc9   : > { %v2306_v62 = vpop.xlane.xlu1 %313  ;;  %1744 = vmatpush3.msra.mxu0 %v2370_v28 }
  0xca   : > { %v2308_v63 = vpop.xlane.xlu0 %310  ;;  %v348_v35 = vrot.slane %v2306_v62, %v2328_v30  ;;  %v2390_v62 = vsub.f32 %v399_v59, %v2370_v28  ;;  %1767 = vmatprep.subr.mxu0 %v2028_v32 }
  0xcb   : > { %v344_v49 = vrot.slane %v2308_v63, %v2322_v21  ;;  %v281_v63 = vsel %vm257_vm0, %v280_v15, %v276_v12 }
  0xcd   : > { %v2312_v13 = vpop.xlane.xlu1 %325  ;;  %v349_v12 = vsel %vm257_vm0, %v348_v35, %v344_v49 }
  0xce   : > { %v2314_v14 = vpop.xlane.xlu0 %322 }
  0xcf   : > { %v363_v39 = vrot.slane %v2314_v14, %v2322_v21  ;;  %v561_v14 = vsub.f32 %v2365_v11, %v2657_v48 }
  0xd1   : > { %v225_v31 = vpop.xlane.xlu1 %224  ;;  %v562_v51 = vand.u32 4294901760, %v561_v14 }
  0xd2   : > { %v213_v50 = vpop.xlane.xlu0 %212  ;;  %v236_v60 = vmul.f32 0.00390625, %v225_v31  ;;  %v256_v31 = vrot.slane %v231_v52, %v2328_v30 }
  0xd3   : > { %v232_v22 = vmul.f32 0.00390625, %v213_v50  ;;  %v367_v50 = vrot.slane %v2312_v13, %v2328_v30  ;;  %1761 = vmatpush3.msra.mxu1 %v562_v51 }
  0xd4   : > { %v285_v52 = vrot.slane %v236_v60, %v2348_v56  ;;  %v258_v21 = vsel %vm257_vm0, %v256_v31, %v251_v29  ;;  %v567_v60 = vand.u32 4294901760, %v2390_v62  ;;  %1762 = vmatprep.subr.mxu1 %v2028_v32 }
  0xd5   : > { %v329_v61 = vpop.xlane.xlu1 %328  ;;  %v263_v13 = vrot.slane %v232_v22, %v2348_v56 }
  0xd6   : > { %v317_v23 = vpop.xlane.xlu0 %316  ;;  %v372_v53 = vrot.slane %v329_v61, %v2348_v56  ;;  %v286_v48 = vsel %vm264_vm1, %v285_v52, %v281_v63 }
  0xd7   : > { %v353_v15 = vrot.slane %v317_v23, %v2348_v56  ;;  %v265_v10 = vsel %vm264_vm1, %v263_v13, %v258_v21 }
  0xd9   : > { %v228_v3 = vpop.xlane.xlu1 %227  ;;  %v354_v52 = vsel %vm264_vm1, %v353_v15, %v349_v12 }
  0xda   : > { %v237_v30 = vmul.f32 0.00390625, %v228_v3  ;;  %v216_v47 = vpop.xlane.xlu0 %215  ;;  %v368_v3 = vsel %vm257_vm0, %v367_v50, %v363_v39 }
  0xdb   : > { %v233_v59 = vmul.f32 0.00390625, %v216_v47  ;;  %v568_v47 = vsub.f32 %v2390_v62, %v567_v60  ;;  %v373_v35 = vsel %vm264_vm1, %v372_v53, %v368_v3 }
  0xdc   : > { %v290_v22 = vrot.slane %v237_v30, %v2351_v57 }
  0xdd   : > { %v270_v29 = vrot.slane %v233_v59, %v2351_v57  ;;  %v332_v61 = vpop.xlane.xlu1 %331  ;;  %v569_v39 = vand.u32 4294901760, %v568_v47 }
  0xde   : > { %v291_v56 = vsel %vm271_vm2, %v290_v22, %v286_v48  ;;  %v377_v23 = vrot.slane %v332_v61, %v2351_v57  ;;  %v320_v31 = vpop.xlane.xlu0 %319 }
  0xdf   : > { %v272_v49 = vsel %vm271_vm2, %v270_v29, %v265_v10  ;;  %v358_v50 = vrot.slane %v320_v31, %v2351_v57  ;;  %1763 = vmatpush3.msra.mxu1 %v569_v39  ;;  %v1637_v31 = vld [vmem:[%s2648_s1 + $0x40] ss:$0 sm:$0xff] }
  0xe0   : > { %v378_v48 = vsel %vm271_vm2, %v377_v23, %v373_v35  ;;  %v293_v63 = vsel %vm292_vm3, %v291_v56, %v272_v49  ;;  %1786 = vmatprep.subr.mxu1 %v2028_v32 }
  0xe1   : > { %v359_v13 = vsel %vm271_vm2, %v358_v50, %v354_v52  ;;  %v301_v57 = vrot.slane %v293_v63, %v2354_v58 }
  0xe2   : > { %v379_v30 = vsel %vm292_vm3, %v378_v48, %v359_v13 }
  0xe3   : > { %v302_v14 = vcombine.high %v301_v57, %v2028_v32  ;;  %v387_v21 = vrot.slane %v379_v30, %v2354_v58 }
  0xe5   : > { %304 = vrot.lane.b32.xlu1 %v302_v14, %s2031_s23  ;;  %v388_v53 = vcombine.high %v387_v21, %v2028_v32 }
  0xe7   : > { %390 = vrot.lane.b32.xlu0 %v388_v53, %s2031_s23 }
 0x157   : > { %v305_v59 = vpop.permute.xlu1 %304 }
 0x158   : > { %v308_v51 = vsel %vm307_vm5, %v301_v57, %v305_v59 }
 0x159   : > { %v391_v12 = vpop.permute.xlu0 %390 }
 0x15a   : > { %v393_v15 = vsel %vm307_vm5, %v387_v21, %v391_v12 }
 0x15b   : > { %v395_v22 = vrot.slane %v393_v15, 7 }
 0x15d   : > { %v398_v3 = vsel %vm397_vm6, %v308_v51, %v395_v22 }
 0x15e   : > { %v414_v29 = vsel %vm412_vm7, %v398_v3, 0 }
 0x15f   : > { %v2433_v61 = vand.u32 4294901760, %v414_v29 }
 0x161   : > { %1765 = vmatmul.mubr.f32.vlgmr.msra.gmra.mxu1 %v2433_v61  ;;  %v490_v58 = vsub.f32 %v414_v29, %v2433_v61 }
 0x162   : > { %1787 = vmatpush3.msra.mxu1 %v2255_v36  ;;  %1802 = vmatprep.mubr.msk.f32.mxu1 %vm2030_vm4, %v2028_v32 }
 0x163   : > { %1788 = vmatprep.subr.mxu1 %v2028_v32  ;;  %v491_v47 = vand.u32 4294901760, %v490_v58 }
 0x164   : > { %1789 = vmatpush3.msra.mxu1 %v2257_v37 }
 0x165   : > { %1790 = vmatprep.subr.mxu1 %v2028_v32  ;;  %v492_v10 = vsub.f32 %v490_v58, %v491_v47 }
 0x166   : > { %1791 = vmatpush3.msra.mxu1 %v2259_v38 }
 0x167   : > { %1792 = vmatprep.subr.mxu1 %v2028_v32  ;;  %v493_v56 = vand.u32 4294901760, %v492_v10 }
 0x168   : > { %1793 = vmatpush3.msra.mxu1 %v2264_v40 }
 0x169   : > { %1794 = vmatprep.subr.mxu1 %v2028_v32  ;;  %1746 = vmatmul.mubr.f32.vlgmr.msra.gmra.mxu0 %v493_v56 }
 0x16a   : > { %1768 = vmatpush3.msra.mxu0 %v2267_v41  ;;  %1795 = vmatpush3.msra.mxu1 %v2319_v20  ;;  %v2668_v41 = vand.u32 4294901760, %v2365_v11 }
 0x16b   : > { %1769 = vmatprep.subr.mxu0 %v2028_v32  ;;  %1796 = vmatprep.subr.mxu1 %v2028_v32 }
 0x16c   : > { %1770 = vmatpush3.msra.mxu0 %v2270_v42  ;;  %1797 = vmatpush3.msra.mxu1 %v2333_v34  ;;  %v954_v42 = vld [vmem:[%s2649_s2] sm:$0xf] }
 0x16d   : > { %1771 = vmatprep.subr.mxu0 %v2028_v32  ;;  %1798 = vmatprep.subr.mxu1 %v2028_v32 }
 0x16e   : > { %1772 = vmatpush3.msra.mxu0 %v2273_v43  ;;  %1799 = vmatpush3.msra.mxu1 %v2344_v55 }
 0x16f   : > { %1773 = vmatprep.subr.mxu0 %v2028_v32  ;;  %1800 = vmatprep.subr.mxu1 %v2028_v32 }
 0x170   : > { %1774 = vmatpush3.msra.mxu0 %v2277_v44  ;;  %1801 = vmatpush3.msra.mxu1 %v2370_v28 }
 0x171   : > { %1775 = vmatprep.subr.mxu0 %v2028_v32  ;;  %1803 = vmatmul.mubr.f32.vlgmr.msra.gmra.mxu1 %v491_v47 }
 0x172   : > { %1824 = vmatprep.subr.mxu1 %v2028_v32  ;;  %1776 = vmatpush3.msra.mxu0 %v2331_v33 }
 0x173   : > { %1825 = vmatpush3.msra.mxu1 %v2255_v36  ;;  %1777 = vmatprep.subr.mxu0 %v2028_v32  ;;  %v2664_v36 = vand.u32 4294901760, %v2273_v43  ;;  %v966_v43 = vsel %vm964_vm8, %v954_v42, 0 }
 0x174   : > { %1826 = vmatprep.subr.mxu1 %v2028_v32  ;;  %1778 = vmatpush3.msra.mxu0 %v2342_v54 }
 0x175   : > { %1827 = vmatpush3.msra.mxu1 %v2257_v37  ;;  %1779 = vmatprep.subr.mxu0 %v2028_v32  ;;  %v2665_v37 = vand.u32 4294901760, %v2277_v44  ;;  %v999_v44 = vand.u32 4294901760, %v966_v43 }
 0x176   : > { %1828 = vmatprep.subr.mxu1 %v2028_v32  ;;  %1780 = vmatpush3.msra.mxu0 %v2365_v11 }
 0x177   : > { %1829 = vmatpush3.msra.mxu1 %v2259_v38  ;;  %1781 = vmatprep.subr.mxu0 %v2028_v32  ;;  %v2666_v38 = vand.u32 4294901760, %v2331_v33 }
 0x178   : > { %1830 = vmatprep.subr.mxu1 %v2028_v32  ;;  %1782 = vmatpush3.msra.mxu0 %v2390_v62 }
 0x179   : > { %1783 = vmatprep.mubr.msk.f32.mxu0 %vm2030_vm4, %v2028_v32  ;;  %1831 = vmatpush3.msra.mxu1 %v2264_v40  ;;  %v2667_v40 = vand.u32 4294901760, %v2342_v54 }
 0x17a   : > { %1784 = vmatmul.mubr.f32.vlgmr.msra.gmra.mxu0 %v490_v58  ;;  %1805 = vmatprep.subr.mxu0 %v2028_v32  ;;  %v1638_v58 = vld [vmem:[%s2649_s2 + $0x4] ss:$0 sm:$0xff] }
 0x17b   : > { %1832 = vmatprep.subr.mxu1 %v2028_v32  ;;  %1806 = vmatpush3.msra.mxu0 %v518_v45  ;;  %v1076_v45 = vsub.f32 %v966_v43, %v999_v44 }
 0x17c   : > { %1833 = vmatpush3.msra.mxu1 %v2319_v20  ;;  %1807 = vmatprep.subr.mxu0 %v2028_v32 }
 0x17d   : > { %1834 = vmatprep.subr.mxu1 %v2028_v32  ;;  %1808 = vmatpush3.msra.mxu0 %v525_v46  ;;  %v1077_v46 = vand.u32 4294901760, %v1076_v45 }
 0x17e   : > { %1835 = vmatpush3.msra.mxu1 %v2333_v34  ;;  %1809 = vmatprep.subr.mxu0 %v2028_v32 }
 0x17f   : > { %1836 = vmatprep.subr.mxu1 %v2028_v32  ;;  %1810 = vmatpush3.msra.mxu0 %v2664_v36  ;;  %v1078_v20 = vsub.f32 %v1076_v45, %v1077_v46 }
 0x180   : > { %1837 = vmatpush3.msra.mxu1 %v2344_v55  ;;  %1811 = vmatprep.subr.mxu0 %v2028_v32 }
 0x181   : > { %1838 = vmatprep.subr.mxu1 %v2028_v32  ;;  %1812 = vmatpush3.msra.mxu0 %v2665_v37  ;;  %v1079_v33 = vand.u32 4294901760, %v1078_v20 }
 0x182   : > { %1839 = vmatpush3.msra.mxu1 %v2370_v28  ;;  %1840 = vmatprep.mubr.msk.f32.mxu1 %vm2030_vm4, %v2028_v32 }
 0x183   : > { %1813 = vmatprep.subr.mxu0 %v2028_v32  ;;  %1841 = vmatmul.mubr.f32.vlgmr.msra.gmra.mxu1 %v2433_v61 }
 0x184   : > { %1814 = vmatpush3.msra.mxu0 %v2666_v38  ;;  %1821 = vmatprep.mubr.msk.f32.mxu0 %vm2030_vm4, %v2028_v32 }
 0x185   : > { %1815 = vmatprep.subr.mxu0 %v2028_v32  ;;  %1848 = vmatprep.subr.mxu1 %v2028_v32 }
 0x186   : > { %1816 = vmatpush3.msra.mxu0 %v2667_v40  ;;  %1850 = vmatprep.mubr.msk.f32.mxu1 %vm2030_vm4, %v2028_v32 }
 0x187   : > { %1817 = vmatprep.subr.mxu0 %v2028_v32  ;;  %1849 = vmatpush3.msra.mxu1 %v1079_v33 }
 0x188   : > { %1818 = vmatpush3.msra.mxu0 %v2668_v41  ;;  %1858 = vmatprep.subr.mxu1 %v2028_v32 }
 0x189   : > { %1819 = vmatprep.subr.mxu0 %v2028_v32 }
 0x18a   : > { %1820 = vmatpush3.msra.mxu0 %v567_v60 }
 0x18b   : > { %1822 = vmatmul.mubr.f32.vlgmr.msra.gmra.mxu0 %v2433_v61  ;;  %1843 = vmatprep.subr.mxu0 %v2028_v32 }
 0x18c   : > { %1845 = vmatprep.mubr.msk.f32.mxu0 %vm2030_vm4, %v2028_v32  ;;  %1844 = vmatpush3.msra.mxu0 %v999_v44 }
 0x18d   : > { %1853 = vmatprep.subr.mxu0 %v2028_v32 }
 0x221   : > { %v606_v34 = vpop.f32.mrf.mxu1 }
 0x223   : > { %v1766_v54 = vpop.f32.mrf.mxu1 }
 0x229   : > { %v495_v55 = vpop.f32.mrf.mxu0 }
 0x22a   : > { %v496_v35 = vadd.f32 %v1637_v31, %v495_v55 }
 0x22b   : > { %v1747_v11 = vpop.f32.mrf.mxu0 }
 0x22c   : > { %v607_v50 = vadd.f32 %v606_v34, %v496_v35  ;;  %v1426_v11 = vsub.s32 0, %v2310_v7 }
 0x231   : > { %v775_v28 = vpop.f32.mrf.mxu1 }
 0x233   : > { %v1804_v62 = vpop.f32.mrf.mxu1 }
 0x23a   : > { %v694_v60 = vpop.f32.mrf.mxu0 }
 0x23b   : > { %v695_v52 = vadd.f32 %v694_v60, %v607_v50 }
 0x23c   : > { %v1785_v23 = vpop.f32.mrf.mxu0 }
 0x23d   : > { %v776_v48 = vadd.f32 %v775_v28, %v695_v52 }
 0x243   : > { %v949_v49 = vpop.f32.mrf.mxu1 }
 0x245   : > { %v1842_v39 = vpop.f32.mrf.mxu1 }
 0x24b   : > { %v870_v63 = vpop.f32.mrf.mxu0 }
 0x24c   : > { %v871_v13 = vadd.f32 %v870_v63, %v776_v48 }
 0x24d   : > { %v1823_v57 = vpop.f32.mrf.mxu0 }
 0x24e   : > { %v950_v30 = vadd.f32 %v949_v49, %v871_v13 }
 0x250   : > { %v953_v14 = vmax.f32 %v950_v30, 0.0 }
 0x252   : > { %v962_v21 = vsel %vm960_vm9, %v953_v14, 0 }
 0x253   : > { %v1034_v53 = vand.u32 4294901760, %v962_v21 }
 0x255   : > { %v1035_v59 = vsub.f32 %v962_v21, %v1034_v53  ;;  %1851 = vmatmul.mubr.f32.vlgmr.msra.gmra.mxu1 %v1034_v53 }
 0x256   : > { %1859 = vmatpush3.msra.mxu1 %v999_v44  ;;  %1860 = vmatprep.mubr.msk.f32.mxu1 %vm2030_vm4, %v2028_v32 }
 0x257   : > { %v1036_v12 = vand.u32 4294901760, %v1035_v59  ;;  %1868 = vmatprep.subr.mxu1 %v2028_v32 }
 0x259   : > { %1861 = vmatmul.mubr.f32.vlgmr.msra.gmra.mxu1 %v1036_v12  ;;  %v1037_v15 = vsub.f32 %v1035_v59, %v1036_v12 }
 0x25a   : > { %1869 = vmatpush3.msra.mxu1 %v999_v44  ;;  %1870 = vmatprep.mubr.msk.f32.mxu1 %vm2030_vm4, %v2028_v32 }
 0x25b   : > { %v1038_v22 = vand.u32 4294901760, %v1037_v15 }
 0x25d   : > { %1846 = vmatmul.mubr.f32.vlgmr.msra.gmra.mxu0 %v1038_v22  ;;  %1871 = vmatmul.mubr.f32.vlgmr.msra.gmra.mxu1 %v1034_v53 }
 0x25e   : > { %1854 = vmatpush3.msra.mxu0 %v1076_v45  ;;  %1855 = vmatprep.mubr.msk.f32.mxu0 %vm2030_vm4, %v2028_v32 }
 0x25f   : > { %1863 = vmatprep.subr.mxu0 %v2028_v32 }
 0x261   : > { %1856 = vmatmul.mubr.f32.vlgmr.msra.gmra.mxu0 %v1035_v59 }
 0x262   : > { %1864 = vmatpush3.msra.mxu0 %v1077_v46  ;;  %1865 = vmatprep.mubr.msk.f32.mxu0 %vm2030_vm4, %v2028_v32 }
 0x265   : > { %1866 = vmatmul.mubr.f32.vlgmr.msra.gmra.mxu0 %v1034_v53 }
 0x315   : > { %v1116_v51 = vpop.f32.mrf.mxu1 }
 0x317   : > { %v1852_v3 = vpop.f32.mrf.mxu1 }
 0x319   : > { %v1264_v29 = vpop.f32.mrf.mxu1 }
 0x31b   : > { %v1862_v61 = vpop.f32.mrf.mxu1 }
 0x31d   : > { %v1040_v47 = vpop.f32.mrf.mxu0  ;;  %v1410_v10 = vpop.f32.mrf.mxu1 }
 0x31e   : > { %v1041_v56 = vadd.f32 %v1638_v58, %v1040_v47 }
 0x31f   : > { %v1847_v36 = vpop.f32.mrf.mxu0  ;;  %v1872_v37 = vpop.f32.mrf.mxu1 }
 0x320   : > { %v1117_v38 = vadd.f32 %v1116_v51, %v1041_v56 }
 0x321   : > { %v1190_v40 = vpop.f32.mrf.mxu0 }
 0x322   : > { %v1191_v41 = vadd.f32 %v1190_v40, %v1117_v38 }
 0x323   : > { %v1857_v42 = vpop.f32.mrf.mxu0 }
 0x324   : > { %v1265_v43 = vadd.f32 %v1264_v29, %v1191_v41 }
 0x325   : > { %v1338_v32 = vpop.f32.mrf.mxu0 }
 0x326   : > { %v1339_v44 = vadd.f32 %v1338_v32, %v1265_v43 }
 0x327   : > { %v1867_v45 = vpop.f32.mrf.mxu0 }
 0x328   : > { %v1411_v46 = vadd.f32 %v1410_v10, %v1339_v44 }
 0x32a   : > { %v1415_v20 = vrot.slane %v1411_v46, 1 }
 0x32c   : > { %v1417_v33 = vadd.f32 %v1415_v20, %v1411_v46 }
 0x32e   : > { %v1639_v34 = vmul.f32 -1.442695, %v1417_v33 }
 0x330   : > { %1927 = vpow2.f32 %v1639_v34 }
 0x33d   : > { %v1928_v54 = vpop.eup %1927 }
 0x33e   : > { %v1421_v55 = vadd.f32 1.0, %v1928_v54 }
 0x340   : > { %1929 = vrcp.f32 %v1421_v55 }
 0x34d   : > { %v1930_v28 = vpop.eup %1929 }
 0x34e   : > { %v1427_v62 = vrot.slane %v1930_v28, %v1426_v11 }
 0x350   : > { %1437 = vbcast.lane.b32.xlu0 %v1427_v62, 272  ;;  %1429 = vbcast.lane.b32.xlu1 %v1427_v62, 256 }
 0x354   : > { %1445 = vbcast.lane.b32.xlu0 %v1427_v62, 288  ;;  %1433 = vbcast.lane.b32.xlu1 %v1427_v62, 264 }
 0x358   : > { %1453 = vbcast.lane.b32.xlu0 %v1427_v62, 304  ;;  %1441 = vbcast.lane.b32.xlu1 %v1427_v62, 280 }
 0x35c   : > { %1449 = vbcast.lane.b32.xlu1 %v1427_v62, 296 }
 0x360   : > { %1457 = vbcast.lane.b32.xlu1 %v1427_v62, 312 }
 0x3c2   : > { %v1438_v60 = vpop.permute.xlu0 %1437  ;;  %v1430_v23 = vpop.permute.xlu1 %1429 }
 0x3c3   : > { %v1476_v31 = vmul.f32 %v1430_v23, %v2171_v2  ;;  %v1477_v35 = vmul.f32 %v1430_v23, %v2176_v4  ;;  %v1508_v49 = vmul.f32 %v1430_v23, %v2165_v0  ;;  %v1509_v7 = vmul.f32 %v1430_v23, %v2168_v1 }
 0x3c4   : > { %v1480_v53 = vmul.f32 %v1438_v60, %v2211_v18  ;;  %v1481_v59 = vmul.f32 %v1438_v60, %v2214_v19  ;;  %v1512_v12 = vmul.f32 %v1438_v60, %v2205_v16  ;;  %v1513_v15 = vmul.f32 %v1438_v60, %v2208_v17 }
 0x3c6   : > { %v1446_v50 = vpop.permute.xlu0 %1445  ;;  %v1434_v39 = vpop.permute.xlu1 %1433 }
 0x3c7   : > { %v1484_v52 = vmul.f32 %v1446_v50, %v2165_v0  ;;  %v1485_v48 = vmul.f32 %v1446_v50, %v2168_v1  ;;  %v1516_v63 = vmul.f32 %v1446_v50, %v2171_v2  ;;  %v1517_v13 = vmul.f32 %v1446_v50, %v2176_v4 }
 0x3c8   : > { %v1478_v47 = vmul.f32 %v1434_v39, %v2187_v8  ;;  %v1479_v10 = vmul.f32 %v1434_v39, %v2190_v9  ;;  %v1510_v56 = vmul.f32 %v1434_v39, %v2179_v5 }
 0x3c9   : > { %v1492_v57 = vsub.f32 %v1476_v31, %v1484_v52  ;;  %v1493_v30 = vsub.f32 %v1477_v35, %v1485_v48  ;;  %v1524_v14 = vadd.f32 %v1516_v63, %v1508_v49  ;;  %v1525_v21 = vadd.f32 %v1517_v13, %v1509_v7 }
 0x3ca   : > { %v1454_v22 = vpop.permute.xlu0 %1453  ;;  %v1442_v0 = vpop.permute.xlu1 %1441 }
 0x3cb   : > { %1500 = vst [vmem:[%s2559_s20] sm:$0xff] %v1492_v57  ;;  %1501 = vst [vmem:[%s2559_s20 + $0x8] sm:$0xff] %v1493_v30  ;;  %v1488_v1 = vmul.f32 %v1454_v22, %v2205_v16  ;;  %v1489_v2 = vmul.f32 %v1454_v22, %v2208_v17  ;;  %v1520_v4 = vmul.f32 %v1454_v22, %v2211_v18 }
 0x3cc   : > { %1648 = vst [vmem:[%s2559_s20 + $0x40] sm:$0xff] %v1524_v14  ;;  %1649 = vst [vmem:[%s2559_s20 + $0x48] sm:$0xff] %v1525_v21  ;;  %v1521_v51 = vmul.f32 %v1454_v22, %v2214_v19  ;;  %v1511_v16 = vmul.f32 %v1434_v39, %v2182_v6  ;;  %v1482_v43 = vmul.f32 %v1442_v0, %v2231_v26 }
 0x3cd   : > { %v1496_v3 = vsub.f32 %v1480_v53, %v1488_v1  ;;  %v1497_v29 = vsub.f32 %v1481_v59, %v1489_v2  ;;  %v1528_v61 = vadd.f32 %v1520_v4, %v1512_v12  ;;  %v1483_v32 = vmul.f32 %v1442_v0, %v2234_v27 }
 0x3ce   : > { %v1529_v58 = vadd.f32 %v1521_v51, %v1513_v15  ;;  %v1450_v36 = vpop.permute.xlu1 %1449 }
 0x3cf   : > { %1504 = vst [vmem:[%s2559_s20 + $0x20] sm:$0xff] %v1496_v3  ;;  %1505 = vst [vmem:[%s2559_s20 + $0x28] sm:$0xff] %v1497_v29  ;;  %v1486_v17 = vmul.f32 %v1450_v36, %v2179_v5  ;;  %v1487_v18 = vmul.f32 %v1450_v36, %v2182_v6  ;;  %v1518_v19 = vmul.f32 %v1450_v36, %v2187_v8 }
 0x3d0   : > { %1652 = vst [vmem:[%s2559_s20 + $0x60] sm:$0xff] %v1528_v61  ;;  %1653 = vst [vmem:[%s2559_s20 + $0x68] sm:$0xff] %v1529_v58  ;;  %v1519_v37 = vmul.f32 %v1450_v36, %v2190_v9  ;;  %v1514_v5 = vmul.f32 %v1442_v0, %v2225_v24  ;;  %v1515_v6 = vmul.f32 %v1442_v0, %v2228_v25 }
 0x3d1   : > { %v1494_v38 = vsub.f32 %v1478_v47, %v1486_v17  ;;  %v1495_v40 = vsub.f32 %v1479_v10, %v1487_v18  ;;  %v1526_v41 = vadd.f32 %v1518_v19, %v1510_v56 }
 0x3d2   : > { %v1527_v42 = vadd.f32 %v1519_v37, %v1511_v16  ;;  %v1458_v44 = vpop.permute.xlu1 %1457 }
 0x3d3   : > { %1502 = vst [vmem:[%s2559_s20 + $0x10] sm:$0xff] %v1494_v38  ;;  %1503 = vst [vmem:[%s2559_s20 + $0x18] sm:$0xff] %v1495_v40  ;;  %v1490_v8 = vmul.f32 %v1458_v44, %v2225_v24  ;;  %v1491_v9 = vmul.f32 %v1458_v44, %v2228_v25  ;;  %v1522_v45 = vmul.f32 %v1458_v44, %v2231_v26 }
 0x3d4   : > { %1650 = vst [vmem:[%s2559_s20 + $0x50] sm:$0xff] %v1526_v41  ;;  %1651 = vst [vmem:[%s2559_s20 + $0x58] sm:$0xff] %v1527_v42  ;;  %v1523_v46 = vmul.f32 %v1458_v44, %v2234_v27 }
 0x3d5   : > { %v1498_v20 = vsub.f32 %v1482_v43, %v1490_v8  ;;  %v1499_v33 = vsub.f32 %v1483_v32, %v1491_v9  ;;  %v1530_v24 = vadd.f32 %v1522_v45, %v1514_v5 }
 0x3d6   : > { %v1531_v34 = vadd.f32 %v1523_v46, %v1515_v6 }
 0x3d7   : > { %1506 = vst [vmem:[%s2559_s20 + $0x30] sm:$0xff] %v1498_v20  ;;  %1507 = vst [vmem:[%s2559_s20 + $0x38] sm:$0xff] %v1499_v33 }
 0x3d8   : > { %1654 = vst [vmem:[%s2559_s20 + $0x70] sm:$0xff] %v1530_v24  ;;  %1655 = vst [vmem:[%s2559_s20 + $0x78] sm:$0xff] %v1531_v34 }
 0x3d9   : > { %1972 = shalt.err (!%p1969_p10)
}
 0x3da   : > { %s1973_s23 = scalar_lea.hbm %s2598_s27, 2048  ;;  %s1977_s7 = scalar_lea.hbm %s2650_s3, 4096 }
 0x3db   : > { %p1974_p0 = scmp.ne.s32.totalorder %s2598_s27, %s1973_s23  ;;  %p1978_p1 = scmp.lt.s32.totalorder %s2598_s27, %s2650_s3 }
 0x3dc   : > { %p1979_p3 = scmp.lt.s32.totalorder %s1977_s7, %s1973_s23 }
 0x3dd   : > { %p1975_p2 = pnand %p1974_p0, %p2669_p12 }
 0x3de   : > { %p1980_p6 = por %p1979_p3, %p1978_p1 }
 0x3df   : > { %p1976_p9 = pneg %p1975_p2 }
 0x3e1   : > { %p1981_p11 = pnand %p1980_p6, %p1976_p9 }
 0x3e3   : > { %1984 = shalt.err (!%p1981_p11)
}
 0x3e4   : > { %s2033_s19 = smov 256   ;;  %s2034_s20 = smov 16  }
 0x3e5   : > { %1875 = dma.vmem_to_hbm [thread:$0]  (%p2669_p12), %s2600_s22, 2048, %s2598_s27, %s1542_s28, %s2033_s19, %s2033_s19, %s2034_s20  }
 0x3e6 PF: > { %s1570_s9 = sand.u32 1, %s2011_s12   ;;  %p2670_p13 = scmp.ne.s32.totalorder %s2661_s25, 0 }
 0x3e7   : > { %p2671_p4 = scmp.ge.s32.totalorder %s2023_s15, 2  ;;  %s1571_s16 = scalar_lea.sflag [#allocation4], %s1570_s9 }
 0x3e9   : > { %p1882_p5 = pnand %p2671_p4, %p2670_p13 }
 0x3eb   : > { %p1883_p7 = pneg %p1882_p5 }
 0x3ed   : > { %2006 = dma.done.wait (%p1883_p7), %s1571_s16, 2048  }
 0x3ee   : > { %2008 = vsyncadd (%p1883_p7), %s1571_s16, 4294965248  ;;  %p16_p8 = scmp.ge.s32.totalorder %s2080_s18, 4   ;;  %s2672_s12 = smov %s2015_s13 }
 0x3ef   : > { %s2673_s13 = smov %s2019_s14  ;;  %s2674_s14 = smov %s2092_s21 }
 0x3f0   : > { %s2675_s15 = smov %s2080_s18  ;;  %18 = sbr.rel (!%p16_p8) target bundleno = 5 (0x5), region = 79 }
 0x3f5   :  { %1576 = vsyncpa [#allocation3], 1 }
 0x3f6   :  { %1578 = vsyncpa [#allocation3 + $0x1], 1 }
 0x3f7   :  { %1579 = vsyncpa [#allocation4], 1 }
 0x3f8   :  { %1581 = vsyncpa [#allocation4 + $0x1], 1 }

</bundles_post_ra>
